<compile_context>
chip_gen: v6e
topology: v6e:2x2x1
jax: 0.10.0
libtpu: 0.0.40
codegen_flags: <defaults>
</compile_context>

<pallas_src>
import math

import jax
import jax.numpy as jnp
from jax.experimental import pallas as pl
from jax.experimental.pallas import tpu as pltpu


def _rope_kernel(cos_ref, sin_ref, x_ref, o_ref):
    # cos_ref / sin_ref: (TS, D) f32 tables (resident across the batch axis).
    # x_ref / o_ref:     (1, TS, D) tile of one batch element.
    x = x_ref[0]                                   # (TS, D), input dtype
    half = x.shape[-1] // 2
    # Lane roll by half: [x1, x2] -> [x2, x1]  (XLU slot, ~free).
    xr = pltpu.roll(x, shift=half, axis=1)
    if x.dtype == jnp.bfloat16:
        # v6e/v7x: native bf16 VPU -- keep the big temporaries in bf16.
        out = (x * cos_ref[...].astype(jnp.bfloat16)
               + xr * sin_ref[...].astype(jnp.bfloat16))
    else:
        out = (x.astype(jnp.float32) * cos_ref[...]
               + xr.astype(jnp.float32) * sin_ref[...])
    o_ref[0] = out.astype(o_ref.dtype)


def _choose_seq_tile(S, D):
    """Largest multiple-of-8 divisor of S whose (TS, D) f32 buffer is <= ~2 MiB."""
    if S % 8 != 0:
        return S  # full-extent block is always legal
    budget_bytes = 2 * 1024 * 1024
    max_ts = max(8, (budget_bytes // (D * 4)) // 8 * 8)
    ts = min(S, max_ts, 1024)
    ts = max(8, ts // 8 * 8)
    while S % ts != 0:       # keep an exact divisor (terminates at 8)
        ts -= 8
    return ts


def scaled_rope(x, seq_len, *, theta=10000.0, use_scaled_rope=True):
    """Apply ScaledRoPE to x of shape (B, S, D); seq_len must equal S."""
    B, S, D = x.shape
    assert seq_len == S, "seq_len must match x.shape[-2] for broadcasting"
    assert D % 2 == 0
    half = D // 2

    # ---- hoisted sin/cos table (computed once, f32, outside the grid) ----
    freqs = theta ** (-jnp.arange(half, dtype=jnp.float32) / half)   # (half,)
    t = jnp.arange(S, dtype=jnp.float32)                             # (S,)
    ang = t[:, None] * freqs[None, :]                                # (S, half)
    sin = jnp.sin(ang)
    cos = jnp.cos(ang)
    if use_scaled_rope:
        scale = math.sqrt(half)
        sin = sin * scale
        cos = cos * scale
    cos_full = jnp.concatenate([cos, cos], axis=-1)                  # (S, D)
    sin_signed = jnp.concatenate([sin, -sin], axis=-1)               # (S, D)

    ts = _choose_seq_tile(S, D)
    n_s = S // ts

    return pl.pallas_call(
        _rope_kernel,
        out_shape=jax.ShapeDtypeStruct((B, S, D), x.dtype),
        grid_spec=pltpu.PrefetchScalarGridSpec(
            num_scalar_prefetch=0,
            grid=(n_s, B),  # batch innermost -> table block stays VMEM-resident
            in_specs=[
                pl.BlockSpec((ts, D), lambda s, b: (s, 0)),          # cos_full
                pl.BlockSpec((ts, D), lambda s, b: (s, 0)),          # sin_signed
                pl.BlockSpec((1, ts, D), lambda s, b: (b, s, 0)),    # x
            ],
            out_specs=pl.BlockSpec((1, ts, D), lambda s, b: (b, s, 0)),
        ),
        compiler_params=pltpu.CompilerParams(
            dimension_semantics=("parallel", "parallel"),
            vmem_limit_bytes=32 * 1024 * 1024,
        ),
    )(cos_full, sin_signed, x)


def _reference_rope(x, seq_len, theta=10000.0, use_scaled_rope=True):
    # Pure-JAX reference mirroring the PyTorch forward.
    half = x.shape[-1] // 2
    freqs = jnp.arange(half, dtype=jnp.float32)
    freqs = theta ** (-freqs / half)
    t = jnp.arange(seq_len, dtype=jnp.float32)
    sin = jnp.sin(t[:, None] * freqs)
    cos = jnp.cos(t[:, None] * freqs)
    if use_scaled_rope:
        sin = sin * math.sqrt(half)
        cos = cos * math.sqrt(half)
    x1, x2 = x[..., :half], x[..., half:]
    return jnp.concatenate([x1 * cos + x2 * sin, x2 * cos - x1 * sin], axis=-1)


if __name__ == "__main__":
    key = jax.random.PRNGKey(0)
    # batch=2, seq=8, hidden=128 (lane-dense last dim, per perf review).
    B, S, D = 2, 8, 128
    x = jax.random.normal(key, (B, S, D), dtype=jnp.float32)

    out = scaled_rope(x, seq_len=S, theta=10000.0, use_scaled_rope=True)
    out = jax.block_until_ready(out)

    ref = _reference_rope(x, S)
    assert out.shape == (B, S, D)
    assert out.dtype == x.dtype
    assert jnp.allclose(out, ref, atol=1e-4, rtol=1e-4), float(
        jnp.max(jnp.abs(out - ref))
    )

    print("KERNEL_OK")
</pallas_src>

<mosaic_0001>
module attributes {stable_mosaic.version = 11 : i64} {
  func.func @_rope_kernel(%arg0: i32, %arg1: i32, %arg2: memref<8x128xf32, #tpu.memory_space<vmem>>, %arg3: memref<8x128xf32, #tpu.memory_space<vmem>>, %arg4: memref<1x8x128xf32, #tpu.memory_space<vmem>>, %arg5: memref<1x8x128xf32, #tpu.memory_space<vmem>>) attributes {dimension_semantics = [#tpu.dimension_semantics<parallel>, #tpu.dimension_semantics<parallel>], iteration_bounds = array<i64: 1, 2>, scalar_prefetch = 0 : i64, scratch_operands = 0 : i64, tpu.core_type = #tpu.core_type<tc>, window_params = [{transform_indices = @transform_0, window_bounds = array<i64: 8, 128>}, {transform_indices = @transform_1, window_bounds = array<i64: 8, 128>}, {transform_indices = @transform_2, window_bounds = array<i64: 1, 8, 128>}, {transform_indices = @transform_3, window_bounds = array<i64: 1, 8, 128>}]} {
    %c0 = arith.constant 0 : index
    %c0_0 = arith.constant 0 : index
    %c0_1 = arith.constant 0 : index
    %0 = vector.load %arg4[%c0, %c0_0, %c0_1] : memref<1x8x128xf32, #tpu.memory_space<vmem>>, vector<1x8x128xf32>
    %1 = vector.shape_cast %0 : vector<1x8x128xf32> to vector<8x128xf32>
    %c64_i32 = arith.constant 64 : i32
    %2 = tpu.dynamic_rotate %1 by %c64_i32 dim 1 : vector<8x128xf32>, i32 -> vector<8x128xf32>
    %c0_2 = arith.constant 0 : index
    %c0_3 = arith.constant 0 : index
    %3 = vector.load %arg2[%c0_2, %c0_3] : memref<8x128xf32, #tpu.memory_space<vmem>>, vector<8x128xf32>
    %4 = arith.mulf %1, %3 : vector<8x128xf32>
    %c0_4 = arith.constant 0 : index
    %c0_5 = arith.constant 0 : index
    %5 = vector.load %arg3[%c0_4, %c0_5] : memref<8x128xf32, #tpu.memory_space<vmem>>, vector<8x128xf32>
    %6 = arith.mulf %2, %5 : vector<8x128xf32>
    %7 = arith.addf %4, %6 : vector<8x128xf32>
    %c0_6 = arith.constant 0 : index
    %c0_7 = arith.constant 0 : index
    %c0_8 = arith.constant 0 : index
    %8 = vector.load %arg5[%c0_6, %c0_7, %c0_8] : memref<1x8x128xf32, #tpu.memory_space<vmem>>, vector<1x8x128xf32>
    %9 = vector.shape_cast %8 : vector<1x8x128xf32> to vector<8x128xf32>
    %10 = vector.shape_cast %7 : vector<8x128xf32> to vector<1x8x128xf32>
    tpu.vector_store %arg5[%c0_6, %c0_7, %c0_8], %10 {strides = array<i32>} : memref<1x8x128xf32, #tpu.memory_space<vmem>>, vector<1x8x128xf32>,
    return
  }
  func.func @transform_0(%arg0: i32, %arg1: i32) -> (i32, i32) {
    %c0_i32 = arith.constant 0 : i32
    %c0_i32_0 = arith.constant 0 : i32
    return %arg0, %c0_i32 : i32, i32
  }
  func.func @transform_1(%arg0: i32, %arg1: i32) -> (i32, i32) {
    %c0_i32 = arith.constant 0 : i32
    %c0_i32_0 = arith.constant 0 : i32
    return %arg0, %c0_i32 : i32, i32
  }
  func.func @transform_2(%arg0: i32, %arg1: i32) -> (i32, i32, i32) {
    %c0_i32 = arith.constant 0 : i32
    %c0_i32_0 = arith.constant 0 : i32
    return %arg1, %arg0, %c0_i32 : i32, i32, i32
  }
  func.func @transform_3(%arg0: i32, %arg1: i32) -> (i32, i32, i32) {
    %c0_i32 = arith.constant 0 : i32
    %c0_i32_0 = arith.constant 0 : i32
    return %arg1, %arg0, %c0_i32 : i32, i32, i32
  }
}

</mosaic_0001>

<bundles_post_ra>
// kernel: tpu_custom_call.1
= control target key start
LH: loop header
LB: loop body
LE: loop exit
PB: predicated region body
PF: predicated region fallthrough
CT: control target
= control target key end

     0   :  { %8 = vsyncpa [#allocation3], 0  ;;  %s832_s0 = inlined_call_operand.hbm [shape: f32[8,128], index: 0, kind: input, shape index: {}]   ;;  %s833_s1 = inlined_call_operand.hbm [shape: f32[8,128], index: 1, kind: input, shape index: {}]   ;;  %s834_s2 = inlined_call_operand.hbm [shape: f32[2,8,128], index: 2, kind: input, shape index: {}]   ;;  %s835_s3 = inlined_call_operand.hbm [shape: f32[2,8,128], index: 3, kind: output, shape index: {}]  }
   0x1   :  { %9 = vsyncpa [#allocation6], 0 }
   0x2   :  { %10 = vsyncpa [#allocation4], 0 }
   0x3   :  { %12 = vsyncpa [#allocation4 + $0x1], 0  ;;  %s663_s12 = smov 0   ;;  %s665_s13 = smov 0  }
   0x4   :  { %s667_s14 = smov 0   ;;  %s669_s15 = smov 0  }
   0x5   :  { %s671_s16 = smov 0   ;;  %s673_s17 = smov 0  }
   0x6 LB: > { %s694_s18 = sadd.s32 4294967295, %s636_s17   ;;  %s368_s19 = sadd.s32 4294967294, %s636_s17   ;;  %s636_s17 = sphi %s673_s17, %s18_s17   ;;  %s632_s16 = sphi %s671_s16, %s858_s16   ;;  %s628_s15 = sphi %s669_s15, %s857_s15   ;;  %s624_s14 = sphi %s667_s14, %s856_s14   ;;  %s620_s13 = sphi %s665_s13, %s855_s13   ;;  %s616_s12 = sphi %s663_s12, %s854_s12  }
   0x7   : > { %p104_p0 = scmp.ne.s32.totalorder %s620_s13, %s616_s12  ;;  %p836_p1 = scmp.eq.s32.totalorder %s694_s18, 0 }
   0x8   : > { %p136_p3 = scmp.eq.s32.totalorder %s368_s19, 1  ;;  %p369_p5 = scmp.ge.s32.totalorder %s636_s17, 1 }
   0x9   : > { %p703_p4 = por %p836_p1, %p104_p0  ;;  %p143_p7 = scmp.lt.s32.totalorder %s636_s17, 3 }
   0xa   : > { %p708_p6 = por %p136_p3, %p104_p0  ;;  %s638_s23 = smov [#allocation2]  }
   0xb   : > { %s839_s20 = scalar_select %p703_p4, 1, 0 }
   0xc   : > { %s840_s21 = scalar_select %p708_p6, 1, 0 }
   0xd   : > { %p713_p8 = pnand %p369_p5, %p143_p7  ;;  %s158_s24 = sshll.u32 %s638_s23, 4  ;;  %s159_s24 = int_to_ptr.vmem [resolvable:$true] %s158_s24 }
   0xe   : > { %s639_s25 = smov [#allocation5]   ;;  %s479_s28 = scalar_lea.vmem %s159_s24, 128 }
   0xf   : > { %s841_s22 = scalar_select %p713_p8, 1, 0 }
  0x10   : > { %p396_p10 = pneg %p713_p8  ;;  %s171_s26 = sshll.u32 %s639_s25, 4  ;;  %s172_s26 = int_to_ptr.vmem [resolvable:$true] %s171_s26 }
  0x11   : > { %p480_p13 = scmp.ne.s32.totalorder %s159_s24, %s479_s28  ;;  %p487_p5 = scmp.lt.s32.totalorder %s159_s24, %s159_s24 }
  0x12   : > { %p722_p11 = pnand %p396_p10, %p836_p1  ;;  %p488_p7 = scmp.lt.s32.totalorder %s479_s28, %s479_s28 }
  0x14   : > { %p470_p12 = pneg %p722_p11  ;;  %p489_p9 = por %p488_p7, %p487_p5 }
  0x16   : > { %p482_p0 = pnand %p480_p13, %p470_p12 }
  0x18   : > { %p483_p3 = pneg %p482_p0 }
  0x1a   : > { %p490_p2 = pnand %p489_p9, %p483_p3 }
  0x1c   : > { %493 = shalt.err (!%p490_p2)
}
  0x1d   : > { %399 = dma.hbm_to_vmem [thread:$0]  (!%p722_p11), %s832_s0, 128, %s159_s24, [#allocation3]  }
  0x1e   : > { %s505_s4 = scalar_lea.vmem %s172_s26, 128  ;;  %p513_p13 = scmp.lt.s32.totalorder %s172_s26, %s172_s26 }
  0x1f   : > { %p506_p10 = scmp.ne.s32.totalorder %s172_s26, %s505_s4  ;;  %p514_p0 = scmp.lt.s32.totalorder %s505_s4, %s505_s4 }
  0x21   : > { %p508_p1 = pnand %p506_p10, %p470_p12  ;;  %p515_p4 = por %p514_p0, %p513_p13 }
  0x23   : > { %p509_p6 = pneg %p508_p1 }
  0x25   : > { %p516_p8 = pnand %p515_p4, %p509_p6 }
  0x27   : > { %519 = shalt.err (!%p516_p8)
}
  0x28   : > { %402 = dma.hbm_to_vmem [thread:$0]  (!%p722_p11), %s833_s1, 128, %s172_s26, [#allocation6]  }
  0x29   : > { %s27_s7 = sadd.s32 1, %s632_s16  ;;  %s91_s8 = sadd.s32 1, %s624_s14 }
  0x2a   : > { %p28_p1 = scmp.ge.s32.totalorder %s27_s7, 2  ;;  %p98_p2 = scmp.ne.s32.totalorder %s624_s14, %s620_s13 }
  0x2b   : > { %p99_p4 = scmp.eq.s32.totalorder %s636_s17, 0  ;;  %p413_p6 = scmp.lt.s32.totalorder %s636_s17, 2 }
  0x2c   : > { %s860_s7 = smov (%p28_p1, %s27_s7), 0  ;;  %p843_p9 = scmp.eq.s32.totalorder %s694_s18, 1 }
  0x2d   : > { %p100_p8 = por %p99_p4, %p98_p2  ;;  %s86_s10 = ssub.s32 %s632_s16, %s860_s7 }
  0x2e   : > { %p754_p12 = por %p843_p9, %p98_p2  ;;  %s182_s11 = sand.u32 1, %s636_s17  }
  0x2f   : > { %p89_p3 = scmp.eq.s32.totalorder %s86_s10, 0  ;;  %s184_s19 = sand.u32 1, %s624_s14  }
  0x30   : > { %s374_s23 = sshll.u32 %s632_s16, 7  ;;  %s373_s25 = sshll.u32 %s184_s19, 3 }
  0x31   : > { %s764_s24 = scalar_select %p89_p3, %s624_s14, %s91_s8  }
  0x32   : > { %s192_s28 = scalar_lea.hbm %s834_s2, %s374_s23  ;;  %p769_p11 = pnand %p413_p6, %p100_p8 }
  0x33   : > { %s186_s30 = scalar_lea.vmem [#allocation7], %s373_s25  ;;  %s183_s5 = scalar_lea.sflag [#allocation3], %s182_s11 }
  0x34   : > { %s194_s4 = sshll.u32 %s186_s30, 4  ;;  %p522_p5 = pneg %p769_p11  ;;  %s195_s4 = int_to_ptr.vmem [resolvable:$true] %s194_s4 }
  0x35   : > { %s533_s6 = scalar_lea.vmem %s195_s4, 128  ;;  %s640_s8 = smov [#allocation7]  }
  0x36   : > { %p534_p7 = scmp.ne.s32.totalorder %s195_s4, %s533_s6  ;;  %s538_s10 = sshll.u32 %s640_s8, 4  ;;  %s539_s10 = int_to_ptr.vmem [resolvable:$false] %s538_s10 }
  0x37   : > { %s540_s19 = scalar_lea.vmem %s539_s10, 256  ;;  %p541_p0 = scmp.lt.s32.totalorder %s195_s4, %s539_s10 }
  0x38   : > { %p536_p10 = pnand %p534_p7, %p522_p5  ;;  %p542_p1 = scmp.lt.s32.totalorder %s540_s19, %s533_s6 }
  0x3a   : > { %p537_p13 = pneg %p536_p10  ;;  %p543_p2 = por %p542_p1, %p541_p0 }
  0x3c   : > { %p544_p4 = pnand %p543_p2, %p537_p13 }
  0x3e   : > { %547 = shalt.err (!%p544_p4)
}
  0x3f   : > { %406 = dma.hbm_to_vmem [thread:$0]  (!%p769_p11), %s192_s28, 128, %s195_s4, %s183_s5  }
  0x40   : > { %p846_p6 = scmp.ne.s32.totalorder %s841_s22, 0 }
  0x41   : > { %p847_p8 = scmp.eq.s32.totalorder (!%p846_p6), %s694_s18, 0 }
  0x42   : > { %203 = sbr.rel (%p846_p6) target bundleno = 213 (0xd5), region = 32 }
  0x47   : > { %599 = dma.done.wait (%p847_p8), [#allocation3], 128   ;;  %p848_p9 = pmov %p847_p8 }
  0x48   : > { %p849_p3 = pmov %p847_p8 }
  0x49   : > { %601 = vsyncadd (%p848_p9), [#allocation3], 4294967168 }
  0x4a   : > { %603 = dma.done.wait (%p849_p3), [#allocation6], 128   ;;  %p850_p5 = pmov %p849_p3 }
  0x4b   : > { %s213_s11 = sand.u32 1, %s694_s18   ;;  %s215_s23 = sand.u32 1, %s620_s13  }
  0x4c   : > { %605 = vsyncadd (%p850_p5), [#allocation6], 4294967168  ;;  %s378_s25 = sshll.u32 %s215_s23, 3  ;;  %s214_s22 = scalar_lea.sflag [#allocation3], %s213_s11 }
  0x4d   : > { %s217_s26 = scalar_lea.vmem [#allocation7], %s378_s25  ;;  %p851_p11 = scmp.ne.s32.totalorder %s839_s20, 0 }
  0x4f   : > { %607 = dma.done.wait (%p851_p11), %s214_s22, 128  }
  0x50   : > { %609 = vsyncadd (%p851_p11), %s214_s22, 4294967168  ;;  %v240_v0 = vld [vmem:[%s217_s26] sm:$0xff]  ;;  %s641_s27 = smov 64   ;;  %v243_v1 = vld [vmem:[#allocation2] sm:$0xff]  ;;  %s381_s28 = sshll.u32 %s628_s15, 7 }
  0x51   : > { %241 = vrot.lane.b32.xlu0 %v240_v0, %s641_s27  ;;  %v245_v2 = vld [vmem:[#allocation5] sm:$0xff]  ;;  %v244_v3 = vmul.f32 %v243_v1, %v240_v0  ;;  %s239_s18 = scalar_lea.vmem [#allocation8], %s378_s25  ;;  %s262_s5 = scalar_lea.hbm %s835_s3, %s381_s28 }
  0x52   : > { %s264_s29 = sshll.u32 %s239_s18, 4  ;;  %s250_s20 = scalar_lea.sflag [#allocation4], %s215_s23  ;;  %s265_s29 = int_to_ptr.vmem [resolvable:$true] %s264_s29 }
  0x53   : > { %s548_s6 = scalar_lea.vmem %s265_s29, 128  ;;  %s642_s8 = smov [#allocation8]  }
  0x54   : > { %p549_p7 = scmp.ne.s32.totalorder %s265_s29, %s548_s6  ;;  %s552_s10 = sshll.u32 %s642_s8, 4  ;;  %s553_s10 = int_to_ptr.vmem [resolvable:$false] %s552_s10 }
  0x55   : > { %s554_s15 = scalar_lea.vmem %s553_s10, 256  ;;  %p555_p0 = scmp.lt.s32.totalorder %s265_s29, %s553_s10 }
  0x56   : > { %p550_p10 = pnand %p549_p7, %p754_p12  ;;  %p556_p1 = scmp.lt.s32.totalorder %s554_s15, %s548_s6 }
  0x58   : > { %p551_p13 = pneg %p550_p10  ;;  %p557_p2 = por %p556_p1, %p555_p0 }
  0x5a   : > { %p558_p4 = pnand %p557_p2, %p551_p13 }
  0xc3   : > { %v242_v4 = vpop.permute.xlu0 %241 }
  0xc4   : > { %v246_v5 = vmul.f32 %v245_v2, %v242_v4 }
  0xc6   : > { %v247_v6 = vadd.f32 %v246_v5, %v244_v3 }
  0xc8   : > { %248 = vst [vmem:[%s239_s18] sm:$0xff] %v247_v6 }
  0xc9   : > { %561 = shalt.err (!%p558_p4)
}
  0xca   : > { %s562_s19 = scalar_lea.hbm %s262_s5, 128  ;;  %s566_s25 = scalar_lea.hbm %s835_s3, 256 }
  0xcb   : > { %p563_p6 = scmp.ne.s32.totalorder %s262_s5, %s562_s19  ;;  %p567_p3 = scmp.lt.s32.totalorder %s262_s5, %s835_s3 }
  0xcc   : > { %p568_p5 = scmp.lt.s32.totalorder %s566_s25, %s562_s19 }
  0xcd   : > { %p564_p8 = pnand %p563_p6, %p754_p12 }
  0xce   : > { %p569_p11 = por %p568_p5, %p567_p3 }
  0xcf   : > { %p565_p9 = pneg %p564_p8 }
  0xd1   : > { %p570_p7 = pnand %p569_p11, %p565_p9 }
  0xd3   : > { %573 = shalt.err (!%p570_p7)
}
  0xd4   : > { %394 = dma.vmem_to_hbm [thread:$0]  (%p754_p12), %s265_s29, 128, %s262_s5, %s250_s20  }
  0xd5 PF: > { %s276_s27 = sand.u32 1, %s616_s12   ;;  %p852_p10 = scmp.ne.s32.totalorder %s840_s21, 0 }
  0xd6   : > { %p853_p13 = scmp.ge.s32.totalorder %s636_s17, 2  ;;  %s277_s28 = scalar_lea.sflag [#allocation4], %s276_s27 }
  0xd8   : > { %p408_p0 = pnand %p853_p13, %p852_p10 }
  0xda   : > { %p409_p1 = pneg %p408_p0 }
  0xdc   : > { %611 = dma.done.wait (%p409_p1), %s277_s28, 128  }
  0xdd   : > { %613 = vsyncadd (%p409_p1), %s277_s28, 4294967168  ;;  %s18_s17 = sadd.s32 1, %s636_s17   ;;  %s854_s12 = smov %s620_s13 }
  0xde   : > { %p15_p2 = scmp.ge.s32.totalorder %s18_s17, 4   ;;  %s855_s13 = smov %s624_s14 }
  0xdf   : > { %s856_s14 = smov %s764_s24  ;;  %s857_s15 = smov %s632_s16 }
  0xe0   : > { %s858_s16 = smov %s860_s7  ;;  %17 = sbr.rel (!%p15_p2) target bundleno = 6 (0x6), region = 86 }
  0xe5   :  { %282 = vsyncpa [#allocation3], 1 }
  0xe6   :  { %284 = vsyncpa [#allocation3 + $0x1], 1 }
  0xe7   :  { %285 = vsyncpa [#allocation6], 1 }
  0xe8   :  { %286 = vsyncpa [#allocation4], 1 }
  0xe9   :  { %288 = vsyncpa [#allocation4 + $0x1], 1 }

</bundles_post_ra>
